<compile_context>
chip_gen: v7x
topology: tpu7x:2x2x1
jax: 0.10.0
libtpu: 0.0.40
codegen_flags: <defaults>
</compile_context>

<pallas_src>
import jax
import jax.numpy as jnp
import numpy as np
from jax.experimental import pallas as pl
from jax.experimental.pallas import tpu as pltpu

LANE = 128


def _round_up(n, m):
    return ((n + m - 1) // m) * m


# ----------------------------------------------------------------------------
# Config (mirrors DPINeuron.__init__ with default hyper-parameters)
# ----------------------------------------------------------------------------
def make_config(n_in, n_out,
                Itau_mem=1e-12, Igain_mem=1e-12, Ith=1e-12, Idc=1e-12, refP=0.0,
                Ipfb_th=1e-12, Ipfb_norm=1e-12,
                Itau_ampa=1e-12, Igain_ampa=1e-12, Iw_ampa=1e-12,
                Itau_shunt=1e-12, Igain_shunt=1e-12, Iw_shunt=1e-12,
                dt=1e-3):
    I0 = 5e-14
    Ut = 0.025
    kappa = (0.75 + 0.66) / 2
    Cmem, Campa, Cshunt = 3e-12, 2e-12, 2e-12
    tau_mem = Ut / kappa * Cmem / Itau_mem
    tau_ampa = Ut / kappa * Campa / Itau_ampa
    tau_shunt = Ut / kappa * Cshunt / Itau_shunt
    return dict(
        n_in=n_in, n_out=n_out, I0=I0, Ut=Ut, kappa=kappa, dt=dt,
        Itau_mem=Itau_mem, Igain_mem=Igain_mem, Ith=Ith, Idc=Idc, refP=refP,
        Ipfb_th=Ipfb_th, Ipfb_norm=Ipfb_norm,
        alpha=Igain_mem / Itau_mem,           # nn.Parameter alpha
        beta=I0 / Itau_mem,                   # nn.Parameter beta
        tau_mem=tau_mem, tau_ampa=tau_ampa, tau_shunt=tau_shunt,
        Itau_ampa=Itau_ampa, Igain_ampa=Igain_ampa, Iw_ampa=Iw_ampa,
        Itau_shunt=Itau_shunt, Igain_shunt=Igain_shunt, Iw_shunt=Iw_shunt,
        # ---- precomputed reciprocals / fused scales (constant divides -> mul) ----
        inv_tau_mem=1.0 / tau_mem,
        inv_tau_ampa=1.0 / tau_ampa,
        inv_tau_shunt=1.0 / tau_shunt,
        inv_Itau_mem=1.0 / Itau_mem,
        syn_scale_ampa=Igain_ampa / Itau_ampa * Iw_ampa,
        syn_scale_shunt=Igain_shunt / Itau_shunt * Iw_shunt,
        pfb_exp=kappa / (kappa + 1.0),
        log_pfb_gain=float(np.log(I0) / (kappa + 1.0)),   # pfb_gain folded into exp
    )


def initialize_state(x, n_out, cfg):
    """DPINeuron.initialize -> one (4, B, n_out_pad) slab:
    planes [Imem, Iampa, Ishunt, refractory]; lane-padded to a multiple of 128."""
    B = x.shape[0]
    n_out_pad = _round_up(n_out, LANE)
    I0 = cfg["I0"]
    currents = jnp.full((3, B, n_out_pad), I0, jnp.float32)
    refr = jnp.zeros((1, B, n_out_pad), jnp.float32)
    return jnp.concatenate([currents, refr], axis=0)


def slab_to_state(slab, n_out):
    """(4, B, n_out_pad) slab -> (Imem, Iampa, Ishunt, refractory) of (B, n_out)."""
    return tuple(slab[k, :, :n_out] for k in range(4))


def prepare_weights(w_ampa, w_shunt, matmul_dtype=jnp.float32):
    """Hoisted out of the step path (done ONCE per weight update):
    Round.apply forward == round; F.linear(X, W) == X @ W.T.
    Returns one fused, lane-padded (n_in, 2*n_out_pad) operand:
      [round(W_ampa).T | 0-pad | round(W_shunt).T | 0-pad]
    so the AMPA/shunt split of the matmul result is lane-tile aligned.
    matmul_dtype=jnp.bfloat16 is exact only while |round(W)| <= 256.
    """
    n_out = w_ampa.shape[0]
    n_out_pad = _round_up(n_out, LANE)
    pad = [(0, 0), (0, n_out_pad - n_out)]
    wa = jnp.pad(jnp.round(w_ampa).T, pad)    # (n_in, n_out_pad)
    ws = jnp.pad(jnp.round(w_shunt).T, pad)   # (n_in, n_out_pad)
    return jnp.concatenate([wa, ws], axis=1).astype(matmul_dtype)


# ----------------------------------------------------------------------------
# Shared elementwise DPI dynamics (runs inside the kernels)
# ----------------------------------------------------------------------------
def _recip(x, approx):
    if approx:
        return pl.reciprocal(x, approx=True)   # EUP slot; ~1e-4 relative error
    return 1.0 / x


def _dpi_dynamics(c, num_ampa, num_shunt, Imem, Iampa, Ishunt, refr, approx):
    I0, dt = c["I0"], c["dt"]
    Iahp = I0
    Inmda = I0

    dIampa = -Iampa * c["inv_tau_ampa"]
    Iampa = Iampa + c["syn_scale_ampa"] * num_ampa
    dIshunt = -Ishunt * c["inv_tau_shunt"]
    Ishunt = Ishunt + c["syn_scale_shunt"] * num_shunt

    Iin = c["Idc"] + Iampa + Inmda - Ishunt
    Iin = jnp.where(refr <= 0.0, Iin, 0.0)      # select, not mask*float
    Iin = jnp.maximum(Iin, I0)

    # Positive feedback: pfb_gain * Imem**p / (1 + exp(-norm*(Imem - th))).
    # Imem is always >= I0 > 0, so exp(p*log(Imem) + log_gain) is valid.
    Ifb = jnp.exp(c["pfb_exp"] * jnp.log(Imem) + c["log_pfb_gain"]) \
        * _recip(1.0 + jnp.exp(-c["Ipfb_norm"] * (Imem - c["Ipfb_th"])), approx)
    f_imem = Ifb * c["inv_Itau_mem"] * (Imem + c["Igain_mem"])

    numer = (c["alpha"] * (Iin - c["Itau_mem"] - Iahp)
             - Imem
             - (Iahp / I0) * c["beta"] * Imem
             + f_imem)
    # numer / (tau_mem*(1+Igain/Imem)) == numer*Imem*inv_tau_mem * 1/(Imem+Igain)
    dImem = numer * Imem * c["inv_tau_mem"] * _recip(Imem + c["Igain_mem"], approx)

    Imem = jnp.maximum(Imem + dImem * dt, I0)
    Iampa = jnp.maximum(Iampa + dIampa * dt, I0)
    Ishunt = jnp.maximum(Ishunt + dIshunt * dt, I0)

    # TODO(synk): fast_sigmoid surrogate is backward-only smoothing; the forward
    # pass is the Heaviside step used here.
    spike_mask = (Imem - c["Ith"]) > 0.0
    spike = spike_mask.astype(jnp.float32)

    Imem = jnp.where(spike_mask, I0, Imem)
    refr = jnp.maximum(refr - dt, 0.0)
    refr = jnp.where(spike_mask, c["refP"], refr)
    return spike, Imem, Iampa, Ishunt, refr


# ----------------------------------------------------------------------------
# Kernel 1: single step (DPINeuron.forward), state slab aliased in place
# ----------------------------------------------------------------------------
def _make_step_kernel(c, n_out_pad, approx):
    def kernel(x_ref, w_ref, s_ref, spike_ref, snew_ref):
        w = w_ref[...]                        # (n_in, 2*n_out_pad), pre-rounded
        num = jnp.dot(x_ref[...].astype(w.dtype), w,
                      preferred_element_type=jnp.float32)
        spike, Imem, Iampa, Ishunt, refr = _dpi_dynamics(
            c, num[:, :n_out_pad], num[:, n_out_pad:],
            s_ref[0], s_ref[1], s_ref[2], s_ref[3], approx)

        spike_ref[...] = spike.astype(spike_ref.dtype)
        snew_ref[0] = Imem                    # plane writes, no stacked temp
        snew_ref[1] = Iampa
        snew_ref[2] = Ishunt
        snew_ref[3] = refr
    return kernel


def make_step_fn(cfg, n_in, n_out, *, approx_recip=False, spike_dtype=jnp.float32):
    n_out_pad = _round_up(n_out, LANE)
    kernel = _make_step_kernel(cfg, n_out_pad, approx_recip)
    vspec = pl.BlockSpec(memory_space=pltpu.MemorySpace.VMEM)

    def step(x, w_cat, state_slab):
        B = x.shape[0]
        assert w_cat.shape == (n_in, 2 * n_out_pad)
        assert state_slab.shape == (4, B, n_out_pad)
        cost = pl.CostEstimate(
            flops=2 * B * n_in * 2 * n_out_pad + 45 * B * n_out_pad,
            transcendentals=3 * B * n_out_pad,
            bytes_accessed=int(x.size * x.dtype.itemsize
                               + w_cat.size * w_cat.dtype.itemsize
                               + 2 * state_slab.size * 4 + B * n_out_pad * 4))
        spike, new_slab = pl.pallas_call(
            kernel,
            out_shape=(jax.ShapeDtypeStruct((B, n_out_pad), spike_dtype),
                       jax.ShapeDtypeStruct((4, B, n_out_pad), jnp.float32)),
            in_specs=[vspec, vspec, vspec],
            out_specs=(vspec, vspec),
            input_output_aliases={2: 1},          # state slab updated in place
            compiler_params=pltpu.CompilerParams(vmem_limit_bytes=32 * 1024 * 1024),
            cost_estimate=cost,
        )(x.astype(w_cat.dtype), w_cat, state_slab)
        return spike[:, :n_out].astype(jnp.float32), new_slab

    return jax.jit(step)


# ----------------------------------------------------------------------------
# Kernel 2: chunked T-step rollout inside one pallas_call.
#   grid = (num_b_blocks [parallel], T // chunk [arbitrary])
#   Weights use a constant index map (resident in VMEM for the whole rollout);
#   the recurrent state lives in a resident output block per batch-block.
#   Per grid step: ONE (chunk*bB, n_in)@(n_in, 2*n_out_pad) MXU dot, then a
#   statically unrolled elementwise loop over the chunk.
# ----------------------------------------------------------------------------
def _make_rollout_kernel(c, n_out_pad, chunk, approx):
    def kernel(x_ref, w_ref, s0_ref, spike_ref, state_ref):
        bB = s0_ref.shape[1]

        @pl.when(pl.program_id(1) == 0)
        def _():
            state_ref[...] = s0_ref[...]      # seed the resident state block

        w = w_ref[...]                        # (n_in, 2*n_out_pad), resident
        num = jnp.dot(x_ref[...].astype(w.dtype), w,
                      preferred_element_type=jnp.float32)   # (chunk*bB, 2*n_out_pad)
        num_a = num[:, :n_out_pad]            # lane-tile aligned free views
        num_s = num[:, n_out_pad:]

        Imem = state_ref[0]
        Iampa = state_ref[1]
        Ishunt = state_ref[2]
        refr = state_ref[3]

        for t in range(chunk):                # static unroll, static slices
            r0 = t * bB
            spike, Imem, Iampa, Ishunt, refr = _dpi_dynamics(
                c, num_a[r0:r0 + bB], num_s[r0:r0 + bB],
                Imem, Iampa, Ishunt, refr, approx)
            spike_ref[r0:r0 + bB, :] = spike.astype(spike_ref.dtype)

        state_ref[0] = Imem                   # single writeback per chunk
        state_ref[1] = Iampa
        state_ref[2] = Ishunt
        state_ref[3] = refr
    return kernel


def make_rollout_fn(cfg, n_in, n_out, *, chunk=8, num_b_blocks=1,
                    approx_recip=False, spike_dtype=jnp.float32):
    n_out_pad = _round_up(n_out, LANE)
    kernel = _make_rollout_kernel(cfg, n_out_pad, chunk, approx_recip)

    def rollout(xs, w_cat, state_slab):
        T, B, _ = xs.shape
        assert xs.shape[2] == n_in
        assert T % chunk == 0, "T must be a multiple of chunk"
        NB = num_b_blocks
        assert B % NB == 0
        bB = B // NB
        assert bB == B or bB % 8 == 0, "per-core batch block must be a multiple of 8"
        NT = T // chunk
        assert w_cat.shape == (n_in, 2 * n_out_pad)
        assert state_slab.shape == (4, B, n_out_pad)

        # One-time layout plumbing (outside the sequential loop):
        # xs_r[b, tc, t*bB + i, :] == xs[tc*chunk + t, b*bB + i, :]
        xs_r = xs.reshape(NT, chunk, NB, bB, n_in).transpose(2, 0, 1, 3, 4)
        xs_r = xs_r.reshape(NB, NT, chunk * bB, n_in).astype(w_cat.dtype)

        cost = pl.CostEstimate(
            flops=T * (2 * B * n_in * 2 * n_out_pad + 45 * B * n_out_pad),
            transcendentals=T * 3 * B * n_out_pad,
            bytes_accessed=int(xs_r.size * xs_r.dtype.itemsize
                               + w_cat.size * w_cat.dtype.itemsize
                               + 2 * state_slab.size * 4
                               + T * B * n_out_pad * jnp.dtype(spike_dtype).itemsize))

        spikes_r, final_slab = pl.pallas_call(
            kernel,
            grid=(NB, NT),
            in_specs=[
                # per-(b, chunk) input block, streamed/double-buffered
                pl.BlockSpec((None, None, chunk * bB, n_in),
                             lambda b, t: (b, t, 0, 0)),
                # fused weights: constant index map -> resident in VMEM
                pl.BlockSpec((n_in, 2 * n_out_pad), lambda b, t: (0, 0)),
                # initial state per batch-block
                pl.BlockSpec((4, bB, n_out_pad), lambda b, t: (0, b, 0)),
            ],
            out_specs=(
                # lane-dense spike slab, one block per (b, chunk)
                pl.BlockSpec((None, None, chunk * bB, n_out_pad),
                             lambda b, t: (b, t, 0, 0)),
                # recurrent state: resident across the (arbitrary) time axis
                pl.BlockSpec((4, bB, n_out_pad), lambda b, t: (0, b, 0)),
            ),
            out_shape=(
                jax.ShapeDtypeStruct((NB, NT, chunk * bB, n_out_pad), spike_dtype),
                jax.ShapeDtypeStruct((4, B, n_out_pad), jnp.float32),
            ),
            compiler_params=pltpu.CompilerParams(
                dimension_semantics=("parallel", "arbitrary"),
                vmem_limit_bytes=32 * 1024 * 1024),
            cost_estimate=cost,
        )(xs_r, w_cat, state_slab)

        # Undo the layout plumbing and drop lane padding.
        spikes = spikes_r.reshape(NB, NT, chunk, bB, n_out_pad)
        spikes = spikes.transpose(1, 2, 0, 3, 4).reshape(T, B, n_out_pad)
        spikes = spikes[..., :n_out].astype(jnp.float32)
        return spikes, final_slab

    return jax.jit(rollout)


# ----------------------------------------------------------------------------
# Pure-JAX reference (mirrors the PyTorch forward 1:1) for a sanity check
# ----------------------------------------------------------------------------
def reference_forward(x, w_ampa, w_shunt, state, c):
    Imem, Iampa, Ishunt, refr = state
    I0, dt, kappa = c["I0"], c["dt"], c["kappa"]
    Iahp, Inmda = I0, I0
    num_ampa = x @ jnp.round(w_ampa).T
    num_shunt = x @ jnp.round(w_shunt).T
    dIampa = -Iampa / c["tau_ampa"]
    Iampa = Iampa + c["Igain_ampa"] / c["Itau_ampa"] * c["Iw_ampa"] * num_ampa
    dIshunt = -Ishunt / c["tau_shunt"]
    Ishunt = Ishunt + c["Igain_shunt"] / c["Itau_shunt"] * c["Iw_shunt"] * num_shunt
    Iin = c["Idc"] + Iampa + Inmda - Ishunt
    Iin = Iin * (refr <= 0.0)
    Iin = jnp.maximum(Iin, I0)
    Ifb = I0 ** (1 / (kappa + 1)) * Imem ** (kappa / (kappa + 1)) \
        / (1 + jnp.exp(-c["Ipfb_norm"] * (Imem - c["Ipfb_th"])))
    f_imem = Ifb / c["Itau_mem"] * (Imem + c["Igain_mem"])
    dImem = (c["alpha"] * (Iin - c["Itau_mem"] - Iahp) - Imem
             - Iahp / I0 * c["beta"] * Imem + f_imem) \
        / (c["tau_mem"] * (1 + c["Igain_mem"] / Imem))
    Imem = jnp.maximum(Imem + dImem * dt, I0)
    Iampa = jnp.maximum(Iampa + dIampa * dt, I0)
    Ishunt = jnp.maximum(Ishunt + dIshunt * dt, I0)
    spike = (Imem - c["Ith"] > 0.0).astype(jnp.float32)
    Imem = (1.0 - spike) * Imem + spike * I0
    refr = jnp.maximum(refr - dt, 0.0)
    refr = (1.0 - spike) * refr + spike * c["refP"]
    return spike, (Imem, Iampa, Ishunt, refr)


if __name__ == "__main__":
    B, n_in, n_out, T, CHUNK = 16, 32, 32, 32, 16
    cfg = make_config(n_in, n_out)

    key = jax.random.PRNGKey(0)
    kx, ka, ks = jax.random.split(key, 3)
    xs = jax.random.normal(kx, (T, B, n_in), jnp.float32)
    # Module __init__ uses constant_(1.0); deterministic random values in [0, 2)
    # are used instead so round(W) is exercised non-trivially.
    w_ampa = jax.random.uniform(ka, (n_out, n_in), jnp.float32, 0.0, 2.0)
    w_shunt = jax.random.uniform(ks, (n_out, n_in), jnp.float32, 0.0, 2.0)

    w_cat = prepare_weights(w_ampa, w_shunt)       # hoisted round+T+pad+concat
    state0 = initialize_state(xs[0], n_out, cfg)   # (4, B, n_out_pad) slab

    # --- single step (matches DPINeuron.forward), slab aliased in place -----
    step_fn = make_step_fn(cfg, n_in, n_out)
    spike, slab1 = jax.block_until_ready(step_fn(xs[0], w_cat, state0))

    spike_ref, st_ref = reference_forward(xs[0], w_ampa, w_shunt,
                                          slab_to_state(state0, n_out), cfg)
    np.testing.assert_allclose(np.asarray(spike), np.asarray(spike_ref),
                               rtol=1e-4, atol=1e-6)
    for got, want in zip(slab_to_state(slab1, n_out), st_ref):
        np.testing.assert_allclose(np.asarray(got), np.asarray(want),
                                   rtol=1e-4, atol=1e-16)

    # --- chunked T-step rollout: matmul hoisted per chunk, weights resident,
    #     2 batch blocks light up v7x's second TensorCore (no-op on v5e/v6e) ---
    rollout_fn = make_rollout_fn(cfg, n_in, n_out, chunk=CHUNK, num_b_blocks=2)
    spikes, slabT = jax.block_until_ready(rollout_fn(xs, w_cat, state0))

    st = slab_to_state(state0, n_out)
    ref_spikes = []
    for t in range(T):
        s, st = reference_forward(xs[t], w_ampa, w_shunt, st, cfg)
        ref_spikes.append(s)
    np.testing.assert_allclose(np.asarray(spikes),
                               np.asarray(jnp.stack(ref_spikes, axis=0)),
                               rtol=1e-4, atol=1e-6)
    for got, want in zip(slab_to_state(slabT, n_out), st):
        np.testing.assert_allclose(np.asarray(got), np.asarray(want),
                                   rtol=1e-4, atol=1e-16)

    print("KERNEL_OK")
</pallas_src>

<mosaic_0001>
module attributes {stable_mosaic.version = 11 : i64} {
  func.func @kernel(%arg0: memref<16x32xf32, #tpu.memory_space<vmem>>, %arg1: memref<32x256xf32, #tpu.memory_space<vmem>>, %arg2: memref<4x16x128xf32, #tpu.memory_space<vmem>>, %arg3: memref<16x128xf32, #tpu.memory_space<vmem>>, %arg4: memref<4x16x128xf32, #tpu.memory_space<vmem>>) attributes {dimension_semantics = [], scalar_prefetch = 0 : i64, scratch_operands = 0 : i64, tpu.core_type = #tpu.core_type<tc>} {
    %c0 = arith.constant 0 : index
    %c0_0 = arith.constant 0 : index
    %0 = vector.load %arg1[%c0, %c0_0] : memref<32x256xf32, #tpu.memory_space<vmem>>, vector<32x256xf32>
    %c0_1 = arith.constant 0 : index
    %c0_2 = arith.constant 0 : index
    %1 = vector.load %arg0[%c0_1, %c0_2] : memref<16x32xf32, #tpu.memory_space<vmem>>, vector<16x32xf32>
    %cst = arith.constant dense<0.000000e+00> : vector<16x256xf32>
    %2 = tpu.matmul %1, %0, %cst {dimension_numbers = #tpu.dot_dimension_numbers<[1], [0], [0], [1], [0, 0, 1, 1], [], []>} : vector<16x32xf32>, vector<32x256xf32>, vector<16x256xf32> -> vector<16x256xf32>
    %3 = vector.extract_strided_slice %2 {offsets = [0, 0], sizes = [16, 128], strides = [1, 1]} : vector<16x256xf32> to vector<16x128xf32>
    %4 = vector.extract_strided_slice %2 {offsets = [0, 128], sizes = [16, 128], strides = [1, 1]} : vector<16x256xf32> to vector<16x128xf32>
    %c0_3 = arith.constant 0 : index
    %c0_4 = arith.constant 0 : index
    %c0_5 = arith.constant 0 : index
    %5 = vector.load %arg2[%c0_3, %c0_4, %c0_5] : memref<4x16x128xf32, #tpu.memory_space<vmem>>, vector<1x16x128xf32>
    %6 = vector.shape_cast %5 : vector<1x16x128xf32> to vector<16x128xf32>
    %c1 = arith.constant 1 : index
    %c0_6 = arith.constant 0 : index
    %c0_7 = arith.constant 0 : index
    %7 = vector.load %arg2[%c1, %c0_6, %c0_7] : memref<4x16x128xf32, #tpu.memory_space<vmem>>, vector<1x16x128xf32>
    %8 = vector.shape_cast %7 : vector<1x16x128xf32> to vector<16x128xf32>
    %c2 = arith.constant 2 : index
    %c0_8 = arith.constant 0 : index
    %c0_9 = arith.constant 0 : index
    %9 = vector.load %arg2[%c2, %c0_8, %c0_9] : memref<4x16x128xf32, #tpu.memory_space<vmem>>, vector<1x16x128xf32>
    %10 = vector.shape_cast %9 : vector<1x16x128xf32> to vector<16x128xf32>
    %c3 = arith.constant 3 : index
    %c0_10 = arith.constant 0 : index
    %c0_11 = arith.constant 0 : index
    %11 = vector.load %arg2[%c3, %c0_10, %c0_11] : memref<4x16x128xf32, #tpu.memory_space<vmem>>, vector<1x16x128xf32>
    %12 = vector.shape_cast %11 : vector<1x16x128xf32> to vector<16x128xf32>
    %cst_12 = arith.constant 0.000000e+00 : f32
    %13 = vector.broadcast %cst_12 : f32 to vector<16x128xf32>
    %14 = arith.subf %13, %8 : vector<16x128xf32>
    %cst_13 = arith.constant 1.410000e+01 : f32
    %15 = vector.broadcast %cst_13 : f32 to vector<16x128xf32>
    %16 = arith.mulf %14, %15 : vector<16x128xf32>
    %cst_14 = arith.constant 9.99999996E-13 : f32
    %17 = vector.broadcast %cst_14 : f32 to vector<16x128xf32>
    %18 = arith.mulf %17, %3 : vector<16x128xf32>
    %19 = arith.addf %8, %18 : vector<16x128xf32>
    %cst_15 = arith.constant 0.000000e+00 : f32
    %20 = vector.broadcast %cst_15 : f32 to vector<16x128xf32>
    %21 = arith.subf %20, %10 : vector<16x128xf32>
    %cst_16 = arith.constant 1.410000e+01 : f32
    %22 = vector.broadcast %cst_16 : f32 to vector<16x128xf32>
    %23 = arith.mulf %21, %22 : vector<16x128xf32>
    %cst_17 = arith.constant 9.99999996E-13 : f32
    %24 = vector.broadcast %cst_17 : f32 to vector<16x128xf32>
    %25 = arith.mulf %24, %4 : vector<16x128xf32>
    %26 = arith.addf %10, %25 : vector<16x128xf32>
    %cst_18 = arith.constant 9.99999996E-13 : f32
    %27 = vector.broadcast %cst_18 : f32 to vector<16x128xf32>
    %28 = arith.addf %27, %19 : vector<16x128xf32>
    %cst_19 = arith.constant 5.000000e-14 : f32
    %29 = vector.broadcast %cst_19 : f32 to vector<16x128xf32>
    %30 = arith.addf %28, %29 : vector<16x128xf32>
    %31 = arith.subf %30, %26 : vector<16x128xf32>
    %cst_20 = arith.constant 0.000000e+00 : f32
    %32 = vector.broadcast %cst_20 : f32 to vector<16x128xf32>
    %33 = arith.cmpf ole, %12, %32 : vector<16x128xf32>
    %cst_21 = arith.constant 0.000000e+00 : f32
    %34 = vector.broadcast %cst_21 : f32 to vector<16x128xf32>
    %35 = arith.select %33, %31, %34 : vector<16x128xi1>, vector<16x128xf32>
    %cst_22 = arith.constant 5.000000e-14 : f32
    %36 = vector.broadcast %cst_22 : f32 to vector<16x128xf32>
    %37 = arith.maximumf %35, %36 : vector<16x128xf32>
    %38 = math.log %6 : vector<16x128xf32>
    %cst_23 = arith.constant 0.413489729 : f32
    %39 = vector.broadcast %cst_23 : f32 to vector<16x128xf32>
    %40 = arith.mulf %39, %38 : vector<16x128xf32>
    %cst_24 = arith.constant -17.9629059 : f32
    %41 = vector.broadcast %cst_24 : f32 to vector<16x128xf32>
    %42 = arith.addf %40, %41 : vector<16x128xf32>
    %43 = math.exp %42 : vector<16x128xf32>
    %cst_25 = arith.constant 9.99999996E-13 : f32
    %44 = vector.broadcast %cst_25 : f32 to vector<16x128xf32>
    %45 = arith.subf %6, %44 : vector<16x128xf32>
    %cst_26 = arith.constant -9.99999996E-13 : f32
    %46 = vector.broadcast %cst_26 : f32 to vector<16x128xf32>
    %47 = arith.mulf %46, %45 : vector<16x128xf32>
    %48 = math.exp %47 : vector<16x128xf32>
    %cst_27 = arith.constant 1.000000e+00 : f32
    %49 = vector.broadcast %cst_27 : f32 to vector<16x128xf32>
    %50 = arith.addf %49, %48 : vector<16x128xf32>
    %cst_28 = arith.constant 1.000000e+00 : f32
    %51 = vector.broadcast %cst_28 : f32 to vector<16x128xf32>
    %52 = arith.divf %51, %50 : vector<16x128xf32>
    %53 = arith.mulf %43, %52 : vector<16x128xf32>
    %cst_29 = arith.constant 9.99999995E+11 : f32
    %54 = vector.broadcast %cst_29 : f32 to vector<16x128xf32>
    %55 = arith.mulf %53, %54 : vector<16x128xf32>
    %cst_30 = arith.constant 9.99999996E-13 : f32
    %56 = vector.broadcast %cst_30 : f32 to vector<16x128xf32>
    %57 = arith.addf %6, %56 : vector<16x128xf32>
    %58 = arith.mulf %55, %57 : vector<16x128xf32>
    %cst_31 = arith.constant 9.99999996E-13 : f32
    %59 = vector.broadcast %cst_31 : f32 to vector<16x128xf32>
    %60 = arith.subf %37, %59 : vector<16x128xf32>
    %cst_32 = arith.constant 5.000000e-14 : f32
    %61 = vector.broadcast %cst_32 : f32 to vector<16x128xf32>
    %62 = arith.subf %60, %61 : vector<16x128xf32>
    %cst_33 = arith.constant 1.000000e+00 : f32
    %63 = vector.broadcast %cst_33 : f32 to vector<16x128xf32>
    %64 = arith.mulf %63, %62 : vector<16x128xf32>
    %65 = arith.subf %64, %6 : vector<16x128xf32>
    %cst_34 = arith.constant 5.000000e-02 : f32
    %66 = vector.broadcast %cst_34 : f32 to vector<16x128xf32>
    %67 = arith.mulf %66, %6 : vector<16x128xf32>
    %68 = arith.subf %65, %67 : vector<16x128xf32>
    %69 = arith.addf %68, %58 : vector<16x128xf32>
    %70 = arith.mulf %69, %6 : vector<16x128xf32>
    %cst_35 = arith.constant 9.39999961 : f32
    %71 = vector.broadcast %cst_35 : f32 to vector<16x128xf32>
    %72 = arith.mulf %70, %71 : vector<16x128xf32>
    %cst_36 = arith.constant 9.99999996E-13 : f32
    %73 = vector.broadcast %cst_36 : f32 to vector<16x128xf32>
    %74 = arith.addf %6, %73 : vector<16x128xf32>
    %cst_37 = arith.constant 1.000000e+00 : f32
    %75 = vector.broadcast %cst_37 : f32 to vector<16x128xf32>
    %76 = arith.divf %75, %74 : vector<16x128xf32>
    %77 = arith.mulf %72, %76 : vector<16x128xf32>
    %cst_38 = arith.constant 1.000000e-03 : f32
    %78 = vector.broadcast %cst_38 : f32 to vector<16x128xf32>
    %79 = arith.mulf %77, %78 : vector<16x128xf32>
    %80 = arith.addf %6, %79 : vector<16x128xf32>
    %cst_39 = arith.constant 5.000000e-14 : f32
    %81 = vector.broadcast %cst_39 : f32 to vector<16x128xf32>
    %82 = arith.maximumf %80, %81 : vector<16x128xf32>
    %cst_40 = arith.constant 1.000000e-03 : f32
    %83 = vector.broadcast %cst_40 : f32 to vector<16x128xf32>
    %84 = arith.mulf %16, %83 : vector<16x128xf32>
    %85 = arith.addf %19, %84 : vector<16x128xf32>
    %cst_41 = arith.constant 5.000000e-14 : f32
    %86 = vector.broadcast %cst_41 : f32 to vector<16x128xf32>
    %87 = arith.maximumf %85, %86 : vector<16x128xf32>
    %cst_42 = arith.constant 1.000000e-03 : f32
    %88 = vector.broadcast %cst_42 : f32 to vector<16x128xf32>
    %89 = arith.mulf %23, %88 : vector<16x128xf32>
    %90 = arith.addf %26, %89 : vector<16x128xf32>
    %cst_43 = arith.constant 5.000000e-14 : f32
    %91 = vector.broadcast %cst_43 : f32 to vector<16x128xf32>
    %92 = arith.maximumf %90, %91 : vector<16x128xf32>
    %cst_44 = arith.constant 9.99999996E-13 : f32
    %93 = vector.broadcast %cst_44 : f32 to vector<16x128xf32>
    %94 = arith.subf %82, %93 : vector<16x128xf32>
    %cst_45 = arith.constant 0.000000e+00 : f32
    %95 = vector.broadcast %cst_45 : f32 to vector<16x128xf32>
    %96 = arith.cmpf ogt, %94, %95 : vector<16x128xf32>
    %97 = arith.extui %96 : vector<16x128xi1> to vector<16x128xi32>
    %98 = arith.sitofp %97 : vector<16x128xi32> to vector<16x128xf32>
    %cst_46 = arith.constant 5.000000e-14 : f32
    %99 = vector.broadcast %cst_46 : f32 to vector<16x128xf32>
    %100 = arith.select %96, %99, %82 : vector<16x128xi1>, vector<16x128xf32>
    %cst_47 = arith.constant 1.000000e-03 : f32
    %101 = vector.broadcast %cst_47 : f32 to vector<16x128xf32>
    %102 = arith.subf %12, %101 : vector<16x128xf32>
    %cst_48 = arith.constant 0.000000e+00 : f32
    %103 = vector.broadcast %cst_48 : f32 to vector<16x128xf32>
    %104 = arith.maximumf %102, %103 : vector<16x128xf32>
    %cst_49 = arith.constant 0.000000e+00 : f32
    %105 = vector.broadcast %cst_49 : f32 to vector<16x128xf32>
    %106 = arith.select %96, %105, %104 : vector<16x128xi1>, vector<16x128xf32>
    %c0_50 = arith.constant 0 : index
    %c0_51 = arith.constant 0 : index
    %107 = vector.load %arg3[%c0_50, %c0_51] : memref<16x128xf32, #tpu.memory_space<vmem>>, vector<16x128xf32>
    tpu.vector_store %arg3[%c0_50, %c0_51], %98 {strides = array<i32>} : memref<16x128xf32, #tpu.memory_space<vmem>>, vector<16x128xf32>,
    %c0_52 = arith.constant 0 : index
    %c0_53 = arith.constant 0 : index
    %c0_54 = arith.constant 0 : index
    %108 = vector.load %arg4[%c0_52, %c0_53, %c0_54] : memref<4x16x128xf32, #tpu.memory_space<vmem>>, vector<1x16x128xf32>
    %109 = vector.shape_cast %108 : vector<1x16x128xf32> to vector<16x128xf32>
    %110 = vector.shape_cast %100 : vector<16x128xf32> to vector<1x16x128xf32>
    tpu.vector_store %arg4[%c0_52, %c0_53, %c0_54], %110 {strides = array<i32>} : memref<4x16x128xf32, #tpu.memory_space<vmem>>, vector<1x16x128xf32>,
    %c1_55 = arith.constant 1 : index
    %c0_56 = arith.constant 0 : index
    %c0_57 = arith.constant 0 : index
    %111 = vector.load %arg4[%c1_55, %c0_56, %c0_57] : memref<4x16x128xf32, #tpu.memory_space<vmem>>, vector<1x16x128xf32>
    %112 = vector.shape_cast %111 : vector<1x16x128xf32> to vector<16x128xf32>
    %113 = vector.shape_cast %87 : vector<16x128xf32> to vector<1x16x128xf32>
    tpu.vector_store %arg4[%c1_55, %c0_56, %c0_57], %113 {strides = array<i32>} : memref<4x16x128xf32, #tpu.memory_space<vmem>>, vector<1x16x128xf32>,
    %c2_58 = arith.constant 2 : index
    %c0_59 = arith.constant 0 : index
    %c0_60 = arith.constant 0 : index
    %114 = vector.load %arg4[%c2_58, %c0_59, %c0_60] : memref<4x16x128xf32, #tpu.memory_space<vmem>>, vector<1x16x128xf32>
    %115 = vector.shape_cast %114 : vector<1x16x128xf32> to vector<16x128xf32>
    %116 = vector.shape_cast %92 : vector<16x128xf32> to vector<1x16x128xf32>
    tpu.vector_store %arg4[%c2_58, %c0_59, %c0_60], %116 {strides = array<i32>} : memref<4x16x128xf32, #tpu.memory_space<vmem>>, vector<1x16x128xf32>,
    %c3_61 = arith.constant 3 : index
    %c0_62 = arith.constant 0 : index
    %c0_63 = arith.constant 0 : index
    %117 = vector.load %arg4[%c3_61, %c0_62, %c0_63] : memref<4x16x128xf32, #tpu.memory_space<vmem>>, vector<1x16x128xf32>
    %118 = vector.shape_cast %117 : vector<1x16x128xf32> to vector<16x128xf32>
    %119 = vector.shape_cast %106 : vector<16x128xf32> to vector<1x16x128xf32>
    tpu.vector_store %arg4[%c3_61, %c0_62, %c0_63], %119 {strides = array<i32>} : memref<4x16x128xf32, #tpu.memory_space<vmem>>, vector<1x16x128xf32>,
    return
  }
}

</mosaic_0001>

<bundles_post_ra>
// kernel: step.1
= control target key start
LH: loop header
LB: loop body
LE: loop exit
PB: predicated region body
PF: predicated region fallthrough
CT: control target
= control target key end

     0   :  { %10 = vsyncpa [#allocation3], 0  ;;  %s565_s0 = inlined_call_operand.hbm [shape: f32[16,32], index: 0, kind: input, shape index: {}]   ;;  %s566_s1 = inlined_call_operand.vmem [shape: f32[32,256], index: 1, kind: input, shape index: {}]   ;;  %s567_s2 = inlined_call_operand.vmem [shape: f32[4,16,128], index: 2, kind: input, shape index: {}, may-alias: {2,4}]   ;;  %s568_s3 = inlined_call_operand.hbm [shape: f32[16,128], index: 3, kind: output, shape index: {0}]   ;;  %s569_s4 = inlined_call_operand.vmem [shape: f32[4,16,128], index: 4, kind: output, shape index: {1}, may-alias: {2,4}]  }
   0x1   :  { %11 = vsyncpa [#allocation4], 0  ;;  %s399_s15 = smov [#allocation2]   ;;  %s351_s19 = scalar_lea.hbm %s565_s0, 256 }
   0x2   :  { %s17_s16 = sshll.u32 %s399_s15, 4  ;;  %p352_p0 = scmp.ne.s32.totalorder %s565_s0, %s351_s19  ;;  %s18_s16 = int_to_ptr.vmem [resolvable:$true] %s17_s16 }
   0x3   :  { %p355_p1 = scmp.lt.u32.totalorder %s351_s19, %s565_s0 }
   0x5   :  { %p357_p2 = pnand %p355_p1, %p352_p0 }
   0x7   :  { %360 = shalt.err (!%p357_p2)
}
   0x8   :  { %s361_s24 = scalar_lea.vmem %s18_s16, 256  ;;  %p366_p4 = scmp.lt.s32.totalorder %s18_s16, %s18_s16 }
   0x9   :  { %p362_p3 = scmp.ne.s32.totalorder %s18_s16, %s361_s24  ;;  %p367_p5 = scmp.lt.s32.totalorder %s361_s24, %s361_s24 }
   0xb   :  { %p368_p6 = por %p367_p5, %p366_p4 }
   0xd   :  { %p369_p7 = pnand %p368_p6, %p362_p3 }
   0xf   :  { %372 = shalt.err (!%p369_p7)
}
  0x10   :  { %s400_s25 = smov 128   ;;  %s401_s26 = smov 8  }
  0x11   :  { %23 = dma.hbm_to_vmem [thread:$0]  %s565_s0, 256, %s18_s16, [#allocation3], %s400_s25, %s400_s25, %s401_s26  }
  0x12   :  { %395 = dma.done.wait [#allocation3], 256  }
  0x13   :  { %396 = vsyncadd [#allocation3], 4294967040  ;;  %v402_v0 = vmov 0.0   ;;  %v32_v1 = vld [vmem:[%s566_s1 + $0x8] sm:$0xff]  ;;  %v34_v2 = vld [vmem:[%s566_s1 + $0x18] sm:$0xff]  ;;  %vm41_vm0 = vcmask 261120  }
  0x14   :  { %112 = vmatprep.mubr.f32.mxu0 %v402_v0  ;;  %118 = vmatprep.mubr.f32.mxu1 %v402_v0  ;;  %v31_v3 = vld [vmem:[%s566_s1] sm:$0xff]  ;;  %v314_v4 = vpack.c.bf16 %v34_v2, %v32_v1  ;;  %v33_v5 = vld [vmem:[%s566_s1 + $0x10] sm:$0xff]  ;;  %v36_v6 = vld [vmem:[%s566_s1 + $0x28] sm:$0xff]  ;;  %s403_s15 = smov [#allocation5]  }
  0x15   :  { %v38_v7 = vld [vmem:[%s566_s1 + $0x38] sm:$0xff]  ;;  %v316_v8 = vpack.c.bf16 %v33_v5, %v31_v3  ;;  %v35_v10 = vld [vmem:[%s566_s1 + $0x20] sm:$0xff]  ;;  %v37_v11 = vld [vmem:[%s566_s1 + $0x30] sm:$0xff]  ;;  %s272_s16 = sshll.u32 %s403_s15, 4  ;;  %s273_s16 = int_to_ptr.vmem [resolvable:$true] %s272_s16 }
  0x16   :  { %v318_v9 = vpack.c.bf16 %v38_v7, %v36_v6  ;;  %315 = vmatprep.subr.bf16.mxu0 %v314_v4  ;;  %322 = vmatprep.subr.bf16.mxu1 %v314_v4  ;;  %v320_v12 = vpack.c.bf16 %v37_v11, %v35_v10  ;;  %v39_v13 = vld [vmem:[#allocation2] sm:$0xff]  ;;  %v40_v14 = vld [vmem:[#allocation2 + $0x8] sm:$0xff]  ;;  %v290_v31 = vld [vmem:[%s567_s2 + $0x10] sm:$0xff]  ;;  %s373_s24 = scalar_lea.vmem %s273_s16, 256  ;;  %p378_p9 = scmp.lt.s32.totalorder %s273_s16, %s273_s16 }
  0x17   :  { %317 = vmatpush1.bf16.msra.mxu0 %v316_v8  ;;  %324 = vmatpush1.bf16.msra.mxu1 %v316_v8  ;;  %v473_v15 = vld [vmem:[%s567_s2] sm:$0xff]  ;;  %v478_v16 = vld [vmem:[%s567_s2 + $0x8] sm:$0xff]  ;;  %v291_v33 = vld [vmem:[%s567_s2 + $0x18] sm:$0xff]  ;;  %v136_v37 = vsub.f32 0.0, %v290_v31  ;;  %p374_p8 = scmp.ne.s32.totalorder %s273_s16, %s373_s24  ;;  %p379_p10 = scmp.lt.s32.totalorder %s373_s24, %s373_s24 }
  0x18   :  { %319 = vmatprep.subr.bf16.mxu0 %v318_v9  ;;  %323 = vmatprep.subr.bf16.mxu1 %v318_v9  ;;  %331 = vlog2.f32 %v473_v15  ;;  %v296_v17 = vadd.f32 -1e-12, %v473_v15  ;;  %v297_v18 = vadd.f32 -1e-12, %v478_v16  ;;  %v292_v34 = vld [vmem:[%s567_s2 + $0x20] sm:$0xff]  ;;  %v293_v39 = vld [vmem:[%s567_s2 + $0x28] sm:$0xff] }
  0x19   :  { %333 = vlog2.f32 %v478_v16  ;;  %v137_v40 = vsub.f32 0.0, %v291_v33  ;;  %v144_v41 = vsub.f32 0.0, %v292_v34  ;;  %v145_v44 = vsub.f32 0.0, %v293_v39  ;;  %v499_v63 = vld [vmem:[%s567_s2 + $0x30] sm:$0xff]  ;;  %v504_v1 = vld [vmem:[%s567_s2 + $0x38] sm:$0xff]  ;;  %p380_p11 = por %p379_p10, %p378_p9 }
  0x1a   :  { %v178_v19 = vmul.f32 -1e-12, %v296_v17  ;;  %v179_v20 = vmul.f32 -1e-12, %v297_v18  ;;  %v138_v45 = vmul.f32 14.1, %v136_v37 }
  0x1b   :  { %321 = vmatpush1.bf16.msra.mxu0 %v320_v12  ;;  %325 = vmatpush1.bf16.msra.mxu1 %v320_v12  ;;  %v139_v46 = vmul.f32 14.1, %v137_v40  ;;  %v146_v47 = vmul.f32 14.1, %v144_v41  ;;  %v147_v48 = vmul.f32 14.1, %v145_v44  ;;  %p381_p12 = pnand %p380_p11, %p374_p8 }
  0x1c   :  { %v180_v21 = vmul.f32 1.442695, %v178_v19  ;;  %v182_v23 = vmul.f32 1.442695, %v179_v20  ;;  %v226_v49 = vmul.f32 0.001, %v138_v45 }
  0x1d   :  { %v227_v52 = vmul.f32 0.001, %v139_v46  ;;  %v232_v53 = vmul.f32 0.001, %v146_v47  ;;  %v233_v60 = vmul.f32 0.001, %v147_v48 }
  0x1e   :  { %288 = vmatmul.mubr.msk.f32.vlgmr.msra.gmra.mrb[0].mxu0 %vm41_vm0, %v39_v13  ;;  %289 = vmatmul.mubr.msk.f32.vlgmr.msra.gmra.mrb[0].mxu1 %vm41_vm0, %v40_v14  ;;  %335 = vpow2.f32 %v180_v21  ;;  %vm158_vm1 = vcmp.le.f32.partialorder %v499_v63, 0.0  ;;  %vm159_vm2 = vcmp.le.f32.partialorder %v504_v1, 0.0 }
  0x1f   :  { %337 = vpow2.f32 %v182_v23 }
  0x22   :  { %v332_v22 = vpop.eup %331 }
  0x23   :  { %v334_v24 = vpop.eup %333  ;;  %v165_v25 = vmul.f32 0.6931472, %v332_v22 }
  0x24   :  { %v167_v26 = vmul.f32 0.6931472, %v334_v24 }
  0x25   :  { %v168_v27 = vmul.f32 0.41348973, %v165_v25  ;;  %v194_v25 = vadd.f32 1e-12, %v473_v15 }
  0x26   :  { %v169_v28 = vmul.f32 0.41348973, %v167_v26 }
  0x27   :  { %v170_v29 = vadd.f32 -17.962906, %v168_v27 }
  0x28   :  { %v336_v30 = vpop.eup %335  ;;  %v171_v35 = vadd.f32 -17.962906, %v169_v28 }
  0x29   :  { %v338_v32 = vpop.eup %337  ;;  %v172_v36 = vmul.f32 1.442695, %v170_v29  ;;  %v184_v38 = vadd.f32 1.0, %v336_v30  ;;  %v195_v29 = vadd.f32 1e-12, %v478_v16 }
  0x2a   :  { %v185_v42 = vadd.f32 1.0, %v338_v32  ;;  %v174_v43 = vmul.f32 1.442695, %v171_v35 }
  0x2b   :  { %339 = vpow2.f32 %v172_v36  ;;  %v204_v36 = vmul.f32 0.05, %v473_v15 }
  0x2c   :  { %341 = vrcp.f32 %v184_v38 }
  0x2d   :  { %343 = vrcp.f32 %v185_v42 }
  0x2e   :  { %345 = vpow2.f32 %v174_v43 }
  0x2f   :  { %347 = vrcp.f32 %v194_v25 }
  0x30   :  { %349 = vrcp.f32 %v195_v29 }
  0x35   :  { %v340_v2 = vpop.eup %339 }
  0x36   :  { %v342_v5 = vpop.eup %341 }
  0x37   :  { %v344_v10 = vpop.eup %343  ;;  %v190_v23 = vmul.f32 %v342_v5, %v340_v2 }
  0x38   :  { %v346_v13 = vpop.eup %345 }
  0x39   :  { %v191_v26 = vmul.f32 %v346_v13, %v344_v10  ;;  %v192_v32 = vmul.f32 1e+12, %v190_v23  ;;  %v348_v48 = vpop.eup %347 }
  0x3b   :  { %v196_v40 = vmul.f32 %v194_v25, %v192_v32 }
  0xf1   :  { %v114_v50 = vpop.f32.mrb[0].mxu0  ;;  %v120_v51 = vpop.f32.mrb[0].mxu1 }
  0xf2   :  { %v140_v54 = vmul.f32 1e-12, %v114_v50  ;;  %v141_v55 = vmul.f32 1e-12, %v120_v51  ;;  %v116_v56 = vpop.f32.mrb[1].mxu0  ;;  %v122_v57 = vpop.f32.mrb[1].mxu1 }
  0xf3   :  { %v148_v58 = vmul.f32 1e-12, %v116_v56  ;;  %v149_v59 = vmul.f32 1e-12, %v122_v57  ;;  %v350_v51 = vpop.eup %349 }
  0xf4   :  { %v142_v61 = vadd.f32 %v290_v31, %v140_v54  ;;  %v143_v62 = vadd.f32 %v291_v33, %v141_v55 }
  0xf5   :  { %v150_v3 = vadd.f32 %v292_v34, %v148_v58  ;;  %v151_v4 = vadd.f32 %v293_v39, %v149_v59  ;;  %v193_v34 = vmul.f32 1e+12, %v191_v26  ;;  %v205_v39 = vmul.f32 0.05, %v478_v16 }
  0xf6   :  { %v152_v6 = vadd.f32 1e-12, %v142_v61  ;;  %v228_v7 = vadd.f32 %v226_v49, %v142_v61  ;;  %v153_v8 = vadd.f32 1e-12, %v143_v62  ;;  %v229_v9 = vadd.f32 %v227_v52, %v143_v62 }
  0xf7   :  { %v234_v11 = vadd.f32 %v232_v53, %v150_v3  ;;  %v235_v12 = vadd.f32 %v233_v60, %v151_v4  ;;  %v197_v42 = vmul.f32 %v195_v29, %v193_v34  ;;  %v306_v58 = vadd.f32 -0.001, %v499_v63 }
  0xf8   :  { %v154_v14 = vadd.f32 5e-14, %v152_v6  ;;  %v230_v17 = vmax.f32 %v228_v7, 5e-14  ;;  %v155_v18 = vadd.f32 5e-14, %v153_v8 }
  0xf9   :  { %v231_v19 = vmax.f32 %v229_v9, 5e-14  ;;  %v236_v20 = vmax.f32 %v234_v11, 5e-14  ;;  %v237_v21 = vmax.f32 %v235_v12, 5e-14 }
  0xfa   :  { %308 = vst [vmem:[%s569_s4 + $0x10] sm:$0xff] %v230_v17  ;;  %v156_v22 = vsub.f32 %v154_v14, %v150_v3  ;;  %v157_v24 = vsub.f32 %v155_v18, %v151_v4  ;;  %v307_v59 = vadd.f32 -0.001, %v504_v1  ;;  %v250_v5 = vmax.f32 %v306_v58, 0.0 }
  0xfb   :  { %309 = vst [vmem:[%s569_s4 + $0x18] sm:$0xff] %v231_v19  ;;  %310 = vst [vmem:[%s569_s4 + $0x20] sm:$0xff] %v236_v20 }
  0xfc   :  { %311 = vst [vmem:[%s569_s4 + $0x28] sm:$0xff] %v237_v21  ;;  %v160_v27 = vsel %vm158_vm1, %v156_v22, 0.0  ;;  %v161_v28 = vsel %vm159_vm2, %v157_v24, 0.0  ;;  %v251_v6 = vmax.f32 %v307_v59, 0.0 }
  0xfd   :  { %v162_v30 = vmax.f32 %v160_v27, 5e-14  ;;  %v163_v31 = vmax.f32 %v161_v28, 5e-14 }
  0xff   :  { %v298_v33 = vadd.f32 -1e-12, %v162_v30  ;;  %v299_v35 = vadd.f32 -1e-12, %v163_v31 }
 0x101   :  { %v300_v37 = vadd.f32 -5e-14, %v298_v33  ;;  %v301_v38 = vadd.f32 -5e-14, %v299_v35 }
 0x103   :  { %v202_v41 = vsub.f32 %v300_v37, %v473_v15  ;;  %v203_v43 = vsub.f32 %v301_v38, %v478_v16 }
 0x105   :  { %v206_v44 = vsub.f32 %v202_v41, %v204_v36  ;;  %v207_v45 = vsub.f32 %v203_v43, %v205_v39 }
 0x107   :  { %v208_v46 = vadd.f32 %v206_v44, %v196_v40  ;;  %v209_v47 = vadd.f32 %v207_v45, %v197_v42 }
 0x109   :  { %v210_v49 = vmul.f32 %v208_v46, %v473_v15  ;;  %v211_v50 = vmul.f32 %v209_v47, %v478_v16 }
 0x10b   :  { %v212_v52 = vmul.f32 9.4, %v210_v49  ;;  %v213_v53 = vmul.f32 9.4, %v211_v50 }
 0x10d   :  { %v218_v54 = vmul.f32 %v348_v48, %v212_v52  ;;  %v219_v55 = vmul.f32 %v350_v51, %v213_v53 }
 0x10f   :  { %v220_v56 = vmul.f32 0.001, %v218_v54  ;;  %v221_v57 = vmul.f32 0.001, %v219_v55 }
 0x111   :  { %v222_v60 = vadd.f32 %v220_v56, %v473_v15  ;;  %v223_v61 = vadd.f32 %v221_v57, %v478_v16 }
 0x113   :  { %v224_v62 = vmax.f32 %v222_v60, 5e-14  ;;  %v225_v2 = vmax.f32 %v223_v61, 5e-14 }
 0x115   :  { %v302_v3 = vadd.f32 -1e-12, %v224_v62  ;;  %v303_v4 = vadd.f32 -1e-12, %v225_v2 }
 0x117   :  { %vm240_vm3 = vcmp.gt.f32.partialorder %v302_v3, 0.0  ;;  %vm241_vm4 = vcmp.gt.f32.partialorder %v303_v4, 0.0 }
 0x118   :  { %v304_v7 = vsel %vm240_vm3, 1.0, %v402_v0  ;;  %v305_v63 = vsel %vm241_vm4, 1.0, %v402_v0  ;;  %v246_v1 = vsel %vm240_vm3, 5e-14, %v224_v62  ;;  %v247_v8 = vsel %vm241_vm4, 5e-14, %v225_v2 }
 0x119   :  { %v252_v15 = vsel %vm240_vm3, 0.0, %v250_v5  ;;  %v253_v9 = vsel %vm241_vm4, 0.0, %v251_v6  ;;  %254 = vst [vmem:[#allocation5] sm:$0xff] %v304_v7  ;;  %255 = vst [vmem:[#allocation5 + $0x8] sm:$0xff] %v305_v63 }
 0x11a   :  { %256 = vst [vmem:[%s569_s4] sm:$0xff] %v246_v1  ;;  %257 = vst [vmem:[%s569_s4 + $0x8] sm:$0xff] %v247_v8 }
 0x11b   :  { %312 = vst [vmem:[%s569_s4 + $0x30] sm:$0xff] %v252_v15  ;;  %313 = vst [vmem:[%s569_s4 + $0x38] sm:$0xff] %v253_v9 }
 0x11c   :  { %384 = shalt.err (!%p381_p12)
}
 0x11d   :  { %s385_s29 = scalar_lea.hbm %s568_s3, 256 }
 0x11e   :  { %p386_p13 = scmp.ne.s32.totalorder %s568_s3, %s385_s29  ;;  %p389_p0 = scmp.lt.u32.totalorder %s385_s29, %s568_s3 }
 0x120   :  { %p391_p1 = pnand %p389_p0, %p386_p13 }
 0x122   :  { %394 = shalt.err (!%p391_p1)
}
 0x123   :  { %278 = dma.vmem_to_hbm [thread:$0]  %s273_s16, 256, %s568_s3, [#allocation4], %s400_s25, %s400_s25, %s401_s26  }
 0x124   :  { %397 = dma.done.wait [#allocation4], 256  }
 0x125   :  { %398 = vsyncadd [#allocation4], 4294967040 }
 0x126   :  { %286 = vsyncpa [#allocation3], 1 }
 0x127   :  { %287 = vsyncpa [#allocation4], 1 }

</bundles_post_ra>
